<compile_context>
chip_gen: v5e
topology: v5e:2x2
jax: 0.10.0
libtpu: 0.0.40
codegen_flags: <defaults>
</compile_context>

<pallas_src>
import math
import numpy as np
import jax
import jax.numpy as jnp
from jax.experimental import pallas as pl
from jax.experimental.pallas import tpu as pltpu

_LANE = 128
_SUBLANE = 8


def _mlp_kernel(x_ref, w1_ref, b1_ref, w2_ref, b2_ref, w3_ref, b3_ref, o_ref):
    # Fused 3-layer MLP on one (TM, in_pad) batch tile.
    # bf16 MXU operands, f32 accumulation; bias add + ReLU in f32.
    # Bias refs are read once per tile (no inner loop -> no repeated broadcasts).
    x = x_ref[...]                                                         # bf16
    h1 = jnp.dot(x, w1_ref[...], preferred_element_type=jnp.float32)
    h1 = jnp.maximum(h1 + b1_ref[...], 0.0).astype(jnp.bfloat16)
    h2 = jnp.dot(h1, w2_ref[...], preferred_element_type=jnp.float32)
    h2 = jnp.maximum(h2 + b2_ref[...], 0.0).astype(jnp.bfloat16)
    o_ref[...] = (
        jnp.dot(h2, w3_ref[...], preferred_element_type=jnp.float32) + b3_ref[...]
    )


def _round_up(n, m):
    return ((n + m - 1) // m) * m


def _choose_tm(batch, in_pad, h1_pad, h2_pad, out_pad, budget_bytes=24 << 20):
    """Pick the batch-tile size so double-buffered streams fit the VMEM budget."""
    # Resident (single-buffered) bf16 weights + f32 biases.
    weight_bytes = 2 * (in_pad * h1_pad + h1_pad * h2_pad + h2_pad * out_pad)
    bias_bytes = 4 * (h1_pad + h2_pad + out_pad)
    # Per batch row: 2x bf16 input buffers + 2x f32 output buffers
    # + f32 and bf16 copies of each hidden activation (kernel temporaries).
    per_row = 2 * 2 * in_pad + 2 * 4 * out_pad + (h1_pad + h2_pad) * (4 + 2)
    avail = budget_bytes - weight_bytes - bias_bytes
    tm = max(_SUBLANE, min(512, avail // per_row if per_row > 0 else 512))
    tm = max(_SUBLANE, (tm // _SUBLANE) * _SUBLANE)        # multiple of 8 sublanes
    tm = min(tm, _round_up(batch, _SUBLANE))               # don't over-tile tiny batches
    return int(tm)


def decomposed_model_forward(x, params):
    """Forward pass: flatten -> Linear+ReLU -> Linear+ReLU -> Linear."""
    w1, b1 = params["w1"], params["b1"]
    w2, b2 = params["w2"], params["b2"]
    w3, b3 = params["w3"], params["b3"]

    batch = x.shape[0]
    in_features = int(np.prod(x.shape[1:]))
    h1_dim, h2_dim, out_dim = w1.shape[1], w2.shape[1], w3.shape[1]

    # Lane-align every contraction / output dim (zero padded, sliced off at the end).
    in_pad = _round_up(in_features, _LANE)
    h1_pad = _round_up(h1_dim, _LANE)
    h2_pad = _round_up(h2_dim, _LANE)
    out_pad = _round_up(out_dim, _LANE)

    tm = _choose_tm(batch, in_pad, h1_pad, h2_pad, out_pad)
    b_pad = _round_up(batch, tm)
    grid = (b_pad // tm,)

    # Glue: x.view(-1, prod(x.shape[1:])) before the first Linear, then pad + bf16.
    x2d = x.reshape(batch, in_features).astype(jnp.bfloat16)
    x2d = jnp.pad(x2d, ((0, b_pad - batch), (0, in_pad - in_features)))

    pad_w = lambda w, r, c: jnp.pad(
        w, ((0, r - w.shape[0]), (0, c - w.shape[1]))
    ).astype(jnp.bfloat16)
    pad_b = lambda v, c: jnp.pad(
        v.reshape(1, -1), ((0, 0), (0, c - v.shape[-1]))
    ).astype(jnp.float32)

    w1p, b1p = pad_w(w1, in_pad, h1_pad), pad_b(b1, h1_pad)
    w2p, b2p = pad_w(w2, h1_pad, h2_pad), pad_b(b2, h2_pad)
    w3p, b3p = pad_w(w3, h2_pad, out_pad), pad_b(b3, out_pad)

    # Weights/biases: constant block index across the grid -> stay resident in VMEM.
    resident = lambda shape: pl.BlockSpec(shape, lambda i: (0,) * len(shape))

    out = pl.pallas_call(
        _mlp_kernel,
        out_shape=jax.ShapeDtypeStruct((b_pad, out_pad), jnp.float32),
        grid=grid,
        in_specs=[
            pl.BlockSpec((tm, in_pad), lambda i: (i, 0)),   # streamed activations
            resident(w1p.shape), resident(b1p.shape),
            resident(w2p.shape), resident(b2p.shape),
            resident(w3p.shape), resident(b3p.shape),
        ],
        out_specs=pl.BlockSpec((tm, out_pad), lambda i: (i, 0)),  # lane-dense stores
        compiler_params=pltpu.CompilerParams(dimension_semantics=("parallel",)),
    )(x2d, w1p, b1p, w2p, b2p, w3p, b3p)

    return out[:batch, :out_dim]


def _xavier_uniform(key, fan_in, fan_out, gain):
    bound = gain * math.sqrt(6.0 / (fan_in + fan_out))
    # Stored (in, out) == transpose of torch nn.Linear's (out, in); bound is
    # symmetric in fan_in/fan_out so the distribution matches xavier_uniform_.
    return jax.random.uniform(key, (fan_in, fan_out), jnp.float32, -bound, bound)


def init_params(key, in_features, hidden1, hidden2, out_features):
    gain = math.sqrt(2.0)  # nn.init.calculate_gain('relu')
    k1, k2, k3 = jax.random.split(key, 3)
    return {
        "w1": _xavier_uniform(k1, in_features, hidden1, gain),
        "b1": jnp.full((hidden1,), 0.01, jnp.float32),
        "w2": _xavier_uniform(k2, hidden1, hidden2, gain),
        "b2": jnp.full((hidden2,), 0.01, jnp.float32),
        "w3": _xavier_uniform(k3, hidden2, out_features, gain),
        "b3": jnp.full((out_features,), 0.01, jnp.float32),
    }


def reference_forward(x, params):
    # Pure-JAX f32 reference of the same module forward.
    x2d = x.reshape(x.shape[0], -1)
    h1 = jnp.maximum(x2d @ params["w1"] + params["b1"], 0.0)
    h2 = jnp.maximum(h1 @ params["w2"] + params["b2"], 0.0)
    return h2 @ params["w3"] + params["b3"]


if __name__ == "__main__":
    key = jax.random.PRNGKey(0)
    k_in, k_param = jax.random.split(key)

    # Shapes consistent with the module: batch=2, input_shape=(4, 16) -> 64 features,
    # layers=[32, 32] hidden Linear+ReLU, output_shape=8.
    batch, input_shape = 2, (4, 16)
    hidden1, hidden2, out_features = 32, 32, 8
    in_features = int(np.prod(input_shape))

    x = jax.random.normal(k_in, (batch,) + input_shape, jnp.float32)
    params = init_params(k_param, in_features, hidden1, hidden2, out_features)

    out = jax.block_until_ready(decomposed_model_forward(x, params))

    ref = reference_forward(x, params)
    # bf16 matmul operands (f32 accumulation) -> loosened tolerance vs the f32 reference.
    np.testing.assert_allclose(np.asarray(out), np.asarray(ref), rtol=5e-2, atol=5e-2)

    print("KERNEL_OK")
</pallas_src>

<mosaic_0001>
module attributes {stable_mosaic.version = 11 : i64} {
  func.func @_mlp_kernel(%arg0: i32, %arg1: memref<8x128xbf16, #tpu.memory_space<vmem>>, %arg2: memref<128x128xbf16, #tpu.memory_space<vmem>>, %arg3: memref<1x128xf32, #tpu.memory_space<vmem>>, %arg4: memref<128x128xbf16, #tpu.memory_space<vmem>>, %arg5: memref<1x128xf32, #tpu.memory_space<vmem>>, %arg6: memref<128x128xbf16, #tpu.memory_space<vmem>>, %arg7: memref<1x128xf32, #tpu.memory_space<vmem>>, %arg8: memref<8x128xf32, #tpu.memory_space<vmem>>) attributes {dimension_semantics = [#tpu.dimension_semantics<parallel>], iteration_bounds = array<i64: 1>, scalar_prefetch = 0 : i64, scratch_operands = 0 : i64, tpu.core_type = #tpu.core_type<tc>, window_params = [{transform_indices = @transform_0, window_bounds = array<i64: 8, 128>}, {pipeline_mode = #tpu.pipeline_mode<synchronous>, transform_indices = @transform_1, window_bounds = array<i64: 128, 128>}, {pipeline_mode = #tpu.pipeline_mode<synchronous>, transform_indices = @transform_2, window_bounds = array<i64: 1, 128>}, {pipeline_mode = #tpu.pipeline_mode<synchronous>, transform_indices = @transform_3, window_bounds = array<i64: 128, 128>}, {pipeline_mode = #tpu.pipeline_mode<synchronous>, transform_indices = @transform_4, window_bounds = array<i64: 1, 128>}, {pipeline_mode = #tpu.pipeline_mode<synchronous>, transform_indices = @transform_5, window_bounds = array<i64: 128, 128>}, {pipeline_mode = #tpu.pipeline_mode<synchronous>, transform_indices = @transform_6, window_bounds = array<i64: 1, 128>}, {transform_indices = @transform_7, window_bounds = array<i64: 8, 128>}]} {
    %c0 = arith.constant 0 : index
    %c0_0 = arith.constant 0 : index
    %0 = vector.load %arg1[%c0, %c0_0] : memref<8x128xbf16, #tpu.memory_space<vmem>>, vector<8x128xbf16>
    %c0_1 = arith.constant 0 : index
    %c0_2 = arith.constant 0 : index
    %1 = vector.load %arg2[%c0_1, %c0_2] : memref<128x128xbf16, #tpu.memory_space<vmem>>, vector<128x128xbf16>
    %cst = arith.constant dense<0.000000e+00> : vector<8x128xf32>
    %2 = tpu.matmul %0, %1, %cst {dimension_numbers = #tpu.dot_dimension_numbers<[1], [0], [0], [1], [0, 0, 1, 1], [], []>} : vector<8x128xbf16>, vector<128x128xbf16>, vector<8x128xf32> -> vector<8x128xf32>
    %c0_3 = arith.constant 0 : index
    %c0_4 = arith.constant 0 : index
    %3 = vector.load %arg3[%c0_3, %c0_4] : memref<1x128xf32, #tpu.memory_space<vmem>>, vector<1x128xf32>
    %4 = vector.broadcast %3 : vector<1x128xf32> to vector<8x128xf32>
    %5 = arith.addf %2, %4 : vector<8x128xf32>
    %cst_5 = arith.constant 0.000000e+00 : f32
    %6 = vector.broadcast %cst_5 : f32 to vector<8x128xf32>
    %7 = arith.maximumf %5, %6 : vector<8x128xf32>
    %8 = arith.truncf %7 : vector<8x128xf32> to vector<8x128xbf16>
    %c0_6 = arith.constant 0 : index
    %c0_7 = arith.constant 0 : index
    %9 = vector.load %arg4[%c0_6, %c0_7] : memref<128x128xbf16, #tpu.memory_space<vmem>>, vector<128x128xbf16>
    %cst_8 = arith.constant dense<0.000000e+00> : vector<8x128xf32>
    %10 = tpu.matmul %8, %9, %cst_8 {dimension_numbers = #tpu.dot_dimension_numbers<[1], [0], [0], [1], [0, 0, 1, 1], [], []>} : vector<8x128xbf16>, vector<128x128xbf16>, vector<8x128xf32> -> vector<8x128xf32>
    %c0_9 = arith.constant 0 : index
    %c0_10 = arith.constant 0 : index
    %11 = vector.load %arg5[%c0_9, %c0_10] : memref<1x128xf32, #tpu.memory_space<vmem>>, vector<1x128xf32>
    %12 = vector.broadcast %11 : vector<1x128xf32> to vector<8x128xf32>
    %13 = arith.addf %10, %12 : vector<8x128xf32>
    %cst_11 = arith.constant 0.000000e+00 : f32
    %14 = vector.broadcast %cst_11 : f32 to vector<8x128xf32>
    %15 = arith.maximumf %13, %14 : vector<8x128xf32>
    %16 = arith.truncf %15 : vector<8x128xf32> to vector<8x128xbf16>
    %c0_12 = arith.constant 0 : index
    %c0_13 = arith.constant 0 : index
    %17 = vector.load %arg6[%c0_12, %c0_13] : memref<128x128xbf16, #tpu.memory_space<vmem>>, vector<128x128xbf16>
    %cst_14 = arith.constant dense<0.000000e+00> : vector<8x128xf32>
    %18 = tpu.matmul %16, %17, %cst_14 {dimension_numbers = #tpu.dot_dimension_numbers<[1], [0], [0], [1], [0, 0, 1, 1], [], []>} : vector<8x128xbf16>, vector<128x128xbf16>, vector<8x128xf32> -> vector<8x128xf32>
    %c0_15 = arith.constant 0 : index
    %c0_16 = arith.constant 0 : index
    %19 = vector.load %arg7[%c0_15, %c0_16] : memref<1x128xf32, #tpu.memory_space<vmem>>, vector<1x128xf32>
    %20 = vector.broadcast %19 : vector<1x128xf32> to vector<8x128xf32>
    %21 = arith.addf %18, %20 : vector<8x128xf32>
    %c0_17 = arith.constant 0 : index
    %c0_18 = arith.constant 0 : index
    %22 = vector.load %arg8[%c0_17, %c0_18] : memref<8x128xf32, #tpu.memory_space<vmem>>, vector<8x128xf32>
    tpu.vector_store %arg8[%c0_17, %c0_18], %21 {strides = array<i32>} : memref<8x128xf32, #tpu.memory_space<vmem>>, vector<8x128xf32>,
    return
  }
  func.func @transform_0(%arg0: i32) -> (i32, i32) {
    %c0_i32 = arith.constant 0 : i32
    %c0_i32_0 = arith.constant 0 : i32
    return %arg0, %c0_i32 : i32, i32
  }
  func.func @transform_1(%arg0: i32) -> (i32, i32) {
    %c0_i32 = arith.constant 0 : i32
    %c0_i32_0 = arith.constant 0 : i32
    %c0_i32_1 = arith.constant 0 : i32
    return %c0_i32, %c0_i32_0 : i32, i32
  }
  func.func @transform_2(%arg0: i32) -> (i32, i32) {
    %c0_i32 = arith.constant 0 : i32
    %c0_i32_0 = arith.constant 0 : i32
    %c0_i32_1 = arith.constant 0 : i32
    return %c0_i32, %c0_i32_0 : i32, i32
  }
  func.func @transform_3(%arg0: i32) -> (i32, i32) {
    %c0_i32 = arith.constant 0 : i32
    %c0_i32_0 = arith.constant 0 : i32
    %c0_i32_1 = arith.constant 0 : i32
    return %c0_i32, %c0_i32_0 : i32, i32
  }
  func.func @transform_4(%arg0: i32) -> (i32, i32) {
    %c0_i32 = arith.constant 0 : i32
    %c0_i32_0 = arith.constant 0 : i32
    %c0_i32_1 = arith.constant 0 : i32
    return %c0_i32, %c0_i32_0 : i32, i32
  }
  func.func @transform_5(%arg0: i32) -> (i32, i32) {
    %c0_i32 = arith.constant 0 : i32
    %c0_i32_0 = arith.constant 0 : i32
    %c0_i32_1 = arith.constant 0 : i32
    return %c0_i32, %c0_i32_0 : i32, i32
  }
  func.func @transform_6(%arg0: i32) -> (i32, i32) {
    %c0_i32 = arith.constant 0 : i32
    %c0_i32_0 = arith.constant 0 : i32
    %c0_i32_1 = arith.constant 0 : i32
    return %c0_i32, %c0_i32_0 : i32, i32
  }
  func.func @transform_7(%arg0: i32) -> (i32, i32) {
    %c0_i32 = arith.constant 0 : i32
    %c0_i32_0 = arith.constant 0 : i32
    return %arg0, %c0_i32 : i32, i32
  }
}

</mosaic_0001>

<bundles_post_ra>
// kernel: tpu_custom_call.1
= control target key start
LH: loop header
LB: loop body
LE: loop exit
PB: predicated region body
PF: predicated region fallthrough
CT: control target
= control target key end

     0   :  { %12 = vsyncpa [#allocation3], 0  ;;  %s685_s0 = inlined_call_operand.hbm [shape: bf16[8,128], index: 0, kind: input, shape index: {}]   ;;  %s686_s1 = inlined_call_operand.hbm [shape: bf16[128,128], index: 1, kind: input, shape index: {}]   ;;  %s687_s2 = inlined_call_operand.vmem [shape: f32[1,128], index: 2, kind: input, shape index: {}]   ;;  %s688_s3 = inlined_call_operand.hbm [shape: bf16[128,128], index: 3, kind: input, shape index: {}]   ;;  %s689_s4 = inlined_call_operand.vmem [shape: f32[1,128], index: 4, kind: input, shape index: {}]   ;;  %s690_s5 = inlined_call_operand.hbm [shape: bf16[128,128], index: 5, kind: input, shape index: {}]   ;;  %s691_s6 = inlined_call_operand.vmem [shape: f32[1,128], index: 6, kind: input, shape index: {}]   ;;  %s692_s7 = inlined_call_operand.hbm [shape: f32[8,128], index: 7, kind: output, shape index: {}]  }
   0x1   :  { %13 = vsyncpa [#allocation6], 0 }
   0x2   :  { %14 = vsyncpa [#allocation9], 0  ;;  %s31_s26 = sshll.u32 %s686_s1, 4  ;;  %s32_s26 = int_to_ptr.hbm [resolvable:$true] %s31_s26 }
   0x3   :  { %15 = vsyncpa [#allocation4], 0  ;;  %s614_s27 = smov [#allocation5]   ;;  %s21_s8 = sshll.u32 %s685_s0, 4  ;;  %s22_s8 = int_to_ptr.hbm [resolvable:$true] %s21_s8 }
   0x4   :  { %s33_s28 = sshll.u32 %s614_s27, 4  ;;  %s615_s9 = smov 64   ;;  %s34_s28 = int_to_ptr.vmem [resolvable:$true] %s33_s28 }
   0x5   :  { %s616_s10 = smov 4   ;;  %s617_s11 = smov [#allocation2]  }
   0x6   :  { %39 = dma.hbm_to_vmem [thread:$0]  %s32_s26, 1024, %s34_s28, [#allocation6], %s615_s9, %s615_s9, %s616_s10  }
   0x7   :  { %s23_s12 = sshll.u32 %s617_s11, 4  ;;  %s46_s15 = sshll.u32 %s688_s3, 4  ;;  %s24_s12 = int_to_ptr.vmem [resolvable:$true] %s23_s12  ;;  %s47_s15 = int_to_ptr.hbm [resolvable:$true] %s46_s15 }
   0x8   :  { %26 = dma.hbm_to_vmem [thread:$0]  %s22_s8, 64, %s24_s12, [#allocation3]  }
   0x9   :  { %s61_s17 = sshll.u32 %s690_s5, 4  ;;  %s618_s18 = smov [#allocation7]   ;;  %s62_s17 = int_to_ptr.hbm [resolvable:$true] %s61_s17 }
   0xa   :  { %s48_s19 = sshll.u32 %s618_s18, 4  ;;  %s619_s0 = smov [#allocation8]   ;;  %s49_s19 = int_to_ptr.vmem [resolvable:$true] %s48_s19 }
   0xb   :  { %54 = dma.hbm_to_vmem [thread:$0]  %s47_s15, 1024, %s49_s19, [#allocation6], %s615_s9, %s615_s9, %s616_s10  }
   0xc   :  { %s63_s20 = sshll.u32 %s619_s0, 4  ;;  %s64_s20 = int_to_ptr.vmem [resolvable:$true] %s63_s20 }
   0xd   :  { %69 = dma.hbm_to_vmem [thread:$0]  %s62_s17, 1024, %s64_s20, [#allocation9], %s615_s9, %s615_s9, %s616_s10  }
   0xe   :  { %606 = dma.done.wait [#allocation3], 64  }
   0xf   :  { %607 = vsyncadd [#allocation3], 4294967232 }
  0x10   :  { %608 = dma.done.wait [#allocation6], 2048  }
  0x11   :  { %609 = vsyncadd [#allocation6], 4294965248 }
  0x12   :  { %610 = dma.done.wait [#allocation9], 1024  }
  0x13   :  { %611 = vsyncadd [#allocation9], 4294966272  ;;  %v459_v0 = vld [vmem:[#allocation5 + $0x38] sm:$0xff]  ;;  %v458_v1 = vld [vmem:[#allocation5 + $0x30] sm:$0xff]  ;;  %s620_s24 = smov [#allocation10]   ;;  %s344_s28 = sshll.u32 %s692_s7, 4  ;;  %s345_s28 = int_to_ptr.hbm [resolvable:$true] %s344_s28 }
  0x14   :  { %157 = vmatpush.bf16.msra.mxu0 %v459_v0  ;;  %v467_v2 = vld [vmem:[#allocation7 + $0x38] sm:$0xff]  ;;  %v466_v3 = vld [vmem:[#allocation7 + $0x30] sm:$0xff]  ;;  %v457_v4 = vld [vmem:[#allocation5 + $0x28] sm:$0xff]  ;;  %s342_s25 = sshll.u32 %s620_s24, 4  ;;  %s343_s25 = int_to_ptr.vmem [resolvable:$true] %s342_s25 }
  0x15   :  { %240 = vmatpush.bf16.msra.mxu1 %v467_v2  ;;  %v465_v5 = vld [vmem:[#allocation7 + $0x28] sm:$0xff]  ;;  %v456_v6 = vld [vmem:[#allocation5 + $0x20] sm:$0xff]  ;;  %v455_v8 = vld [vmem:[#allocation5 + $0x18] sm:$0xff] }
  0x16   :  { %v464_v7 = vld [vmem:[#allocation7 + $0x20] sm:$0xff]  ;;  %v463_v9 = vld [vmem:[#allocation7 + $0x18] sm:$0xff]  ;;  %v454_v10 = vld [vmem:[#allocation5 + $0x10] sm:$0xff] }
  0x17   :  { %v462_v11 = vld [vmem:[#allocation7 + $0x10] sm:$0xff]  ;;  %v453_v12 = vld [vmem:[#allocation5 + $0x8] sm:$0xff]  ;;  %v452_v13 = vld [vmem:[#allocation5] sm:$0xff] }
  0x18   :  { %158 = vmatpush.bf16.msra.mxu0 %v458_v1  ;;  %v88_v14 = vld [vmem:[#allocation2] sm:$0xf]  ;;  %v461_v15 = vld [vmem:[#allocation7 + $0x8] sm:$0xff]  ;;  %v460_v16 = vld [vmem:[#allocation7] sm:$0xff] }
  0x19   :  { %241 = vmatpush.bf16.msra.mxu1 %v466_v3  ;;  %v475_v17 = vld [vmem:[#allocation8 + $0x38] sm:$0xff]  ;;  %v474_v18 = vld [vmem:[#allocation8 + $0x30] sm:$0xff]  ;;  %v473_v19 = vld [vmem:[#allocation8 + $0x28] sm:$0xff] }
  0x1a   :  { %323 = vmatpush.bf16.msra.mxu2 %v475_v17  ;;  %v472_v20 = vld [vmem:[#allocation8 + $0x20] sm:$0xff]  ;;  %v471_v21 = vld [vmem:[#allocation8 + $0x18] sm:$0xff]  ;;  %v470_v22 = vld [vmem:[#allocation8 + $0x10] sm:$0xff] }
  0x1b   :  { %v483_v23 = vld [vmem:[%s687_s2] ss:$0 sm:$0xff]  ;;  %v469_v29 = vld [vmem:[#allocation8 + $0x8] sm:$0xff]  ;;  %v468_v30 = vld [vmem:[#allocation8] sm:$0xff] }
  0x1c   :  { %159 = vmatpush.bf16.msra.mxu0 %v457_v4  ;;  %v484_v31 = vld [vmem:[%s689_s4] ss:$0 sm:$0xff] }
  0x1d   :  { %242 = vmatpush.bf16.msra.mxu1 %v465_v5  ;;  %v485_v37 = vld [vmem:[%s691_s6] ss:$0 sm:$0xff] }
  0x1e   :  { %324 = vmatpush.bf16.msra.mxu2 %v474_v18 }
  0x20   :  { %160 = vmatpush.bf16.msra.mxu0 %v456_v6 }
  0x21   :  { %243 = vmatpush.bf16.msra.mxu1 %v464_v7 }
  0x22   :  { %325 = vmatpush.bf16.msra.mxu2 %v473_v19 }
  0x24   :  { %161 = vmatpush.bf16.msra.mxu0 %v455_v8 }
  0x25   :  { %244 = vmatpush.bf16.msra.mxu1 %v463_v9 }
  0x26   :  { %326 = vmatpush.bf16.msra.mxu2 %v472_v20 }
  0x28   :  { %162 = vmatpush.bf16.msra.mxu0 %v454_v10 }
  0x29   :  { %245 = vmatpush.bf16.msra.mxu1 %v462_v11 }
  0x2a   :  { %327 = vmatpush.bf16.msra.mxu2 %v471_v21 }
  0x2c   :  { %163 = vmatpush.bf16.msra.mxu0 %v453_v12 }
  0x2d   :  { %246 = vmatpush.bf16.msra.mxu1 %v461_v15 }
  0x2e   :  { %328 = vmatpush.bf16.msra.mxu2 %v470_v22 }
  0x30   :  { %164 = vmatpush.bf16.msra.mxu0 %v452_v13 }
  0x31   :  { %247 = vmatpush.bf16.msra.mxu1 %v460_v16 }
  0x32   :  { %329 = vmatpush.bf16.msra.mxu2 %v469_v29 }
  0x33   :  { %165 = vmatmul.bf16.vlgmr.msra.gmra.mxu0 %v88_v14 }
  0x36   :  { %330 = vmatpush.bf16.msra.mxu2 %v468_v30 }
  0xb0   :  { %v166_v24 = vpop.f32.mrf.mxu0 }
  0xb1   :  { %v167_v25 = vadd.f32 %v483_v23, %v166_v24 }
  0xb3   :  { %v170_v26 = vmax.f32 %v167_v25, 0.0 }
  0xb5   :  { %v171_v27 = vpack.c.bf16 %v170_v26, %v170_v26 }
  0xb7   :  { %248 = vmatmul.bf16.vlgmr.msra.gmra.mxu1 %v171_v27 }
  0xb8   :  { %v168_v28 = vpop.f32.mrf.mxu0 }
 0x134   :  { %v249_v32 = vpop.f32.mrf.mxu1 }
 0x135   :  { %v250_v33 = vadd.f32 %v484_v31, %v249_v32 }
 0x137   :  { %v253_v34 = vmax.f32 %v250_v33, 0.0 }
 0x139   :  { %v254_v35 = vpack.c.bf16 %v253_v34, %v253_v34 }
 0x13b   :  { %331 = vmatmul.bf16.vlgmr.msra.gmra.mxu2 %v254_v35 }
 0x13c   :  { %v251_v36 = vpop.f32.mrf.mxu1 }
 0x1be   :  { %v332_v38 = vpop.f32.mrf.mxu2 }
 0x1bf   :  { %v333_v39 = vadd.f32 %v485_v37, %v332_v38 }
 0x1c1   :  { %336 = vst [vmem:[#allocation10] sm:$0xff] %v333_v39 }
 0x1c2   :  { %347 = dma.vmem_to_hbm [thread:$0]  %s343_s25, 128, %s345_s28, [#allocation4]  }
 0x1c6   :  { %v334_v40 = vpop.f32.mrf.mxu2 }
 0x1c7   :  { %612 = dma.done.wait [#allocation4], 128  }
 0x1c8   :  { %613 = vsyncadd [#allocation4], 4294967168 }
 0x1c9   :  { %352 = vsyncpa [#allocation3], 1 }
 0x1ca   :  { %353 = vsyncpa [#allocation6], 1 }
 0x1cb   :  { %354 = vsyncpa [#allocation9], 1 }
 0x1cc   :  { %355 = vsyncpa [#allocation4], 1 }

</bundles_post_ra>
